<compile_context>
chip_gen: v5e
topology: v5e:2x2
jax: 0.10.0
libtpu: 0.0.40
codegen_flags: <defaults>
</compile_context>

<pallas_src>
import functools

import jax
import jax.numpy as jnp
from jax.experimental import pallas as pl
from jax.experimental.pallas import tpu as pltpu

_LANE = 128      # lane width: last dim padded to multiples of this
_SUBLANE = 8     # sublane width: batch padded to multiples of this


def _round_up(x, m):
    return ((x + m - 1) // m) * m


# ---------------------------------------------------------------------------
# Activations (same semantics as the torch string_to_activation map)
# ---------------------------------------------------------------------------
def _act_kernel(name, x):
    """Kernel-side activation (may use Pallas primitives). x is f32."""
    if name == "identity":
        return x
    if name == "relu":
        return jnp.maximum(x, 0.0)
    if name == "leaky_relu":
        return jnp.where(x >= 0.0, x, 0.01 * x)
    if name == "sigmoid":
        # exp + approx reciprocal both run on the EUP slot (no VPU divide)
        return pl.reciprocal(1.0 + jnp.exp(-x), approx=True)
    if name == "tanh":
        return jnp.tanh(x)
    if name == "elu":
        # clamp exp arg so the masked branch can't produce inf
        return jnp.where(x > 0.0, x, jnp.exp(jnp.minimum(x, 0.0)) - 1.0)
    raise ValueError(f"unknown activation {name}")


def _act_ref(name, x):
    """Pure-jnp activation for the verification reference."""
    if name == "identity":
        return x
    if name == "relu":
        return jnp.maximum(x, 0.0)
    if name == "leaky_relu":
        return jnp.where(x >= 0.0, x, 0.01 * x)
    if name == "sigmoid":
        return jax.nn.sigmoid(x)
    if name == "tanh":
        return jnp.tanh(x)
    if name == "elu":
        return jnp.where(x > 0.0, x, jnp.exp(jnp.minimum(x, 0.0)) - 1.0)
    raise ValueError(f"unknown activation {name}")


_TRANSCENDENTALS = {
    "identity": 0, "relu": 0, "leaky_relu": 0, "sigmoid": 2, "tanh": 1, "elu": 1,
}


# ---------------------------------------------------------------------------
# Fused MLP kernel: the whole layer stack in one kernel body.
#   refs = (x_ref, w0_ref, b0_ref, w1_ref, b1_ref, ..., o_ref)
#   x_ref: (bm, D0_pad) f32, w_i: (Din_pad, Dout_pad) bf16, b_i: (1, Dout_pad) f32
# ---------------------------------------------------------------------------
def _fused_mlp_kernel(*refs, activations):
    x_ref = refs[0]
    o_ref = refs[-1]
    h = x_ref[...]                                     # f32 activations
    for i, act in enumerate(activations):              # static (genome-fixed) loop
        w = refs[1 + 2 * i][...]                       # bf16 weight tile (MXU)
        b = refs[2 + 2 * i][...]                       # f32 bias row
        y = jnp.dot(h.astype(jnp.bfloat16), w,
                    preferred_element_type=jnp.float32) + b
        h = _act_kernel(act, y)                        # f32 on VPU/EUP
    o_ref[...] = h.astype(o_ref.dtype)


# ---------------------------------------------------------------------------
# NeuralNetwork_Deep equivalent
# ---------------------------------------------------------------------------
class NeuralNetworkDeepPallas:
    """Genome-built stack of (Linear, activation) pairs, fused on TPU."""

    _MAX_SINGLE_BLOCK_BATCH = 128   # padded-batch <= this -> single block, no grid
    _BATCH_TILE = 128               # batch tile for the gridded path

    def __init__(self, layer_sizes, activations, key):
        assert len(activations) == len(layer_sizes) - 1
        self.layer_sizes = list(layer_sizes)
        self.activations = tuple(activations)
        self.padded_sizes = [_round_up(d, _LANE) for d in layer_sizes]

        # Pre-transpose to (Din, Dout), zero-pad to lane-dense 128-multiples,
        # cast the matmul operand (weights) to bf16 ONCE at init.
        self.params = []
        for i in range(len(layer_sizes) - 1):
            din, dout = layer_sizes[i], layer_sizes[i + 1]
            dinp, doutp = self.padded_sizes[i], self.padded_sizes[i + 1]
            key, wk, bk = jax.random.split(key, 3)
            bound = 1.0 / float(din) ** 0.5   # nn.Linear default init bound
            w = jax.random.uniform(wk, (dout, din), jnp.float32, -bound, bound)
            b = jax.random.uniform(bk, (dout,), jnp.float32, -bound, bound)
            w_pad = jnp.zeros((dinp, doutp), jnp.float32).at[:din, :dout].set(w.T)
            b_pad = jnp.zeros((1, doutp), jnp.float32).at[0, :dout].set(b)
            self.params.append((w_pad.astype(jnp.bfloat16), b_pad))

    # -- helpers ------------------------------------------------------------
    def _flat_params(self):
        flat = []
        for w, b in self.params:
            flat.extend((w, b))
        return flat

    def _cost_estimate(self, b_pad):
        flops = 0
        trans = 0
        nbytes = b_pad * self.padded_sizes[0] * 4 + b_pad * self.padded_sizes[-1] * 4
        for i, act in enumerate(self.activations):
            dinp, doutp = self.padded_sizes[i], self.padded_sizes[i + 1]
            flops += 2 * b_pad * dinp * doutp
            trans += _TRANSCENDENTALS[act] * b_pad * doutp
            nbytes += dinp * doutp * 2 + doutp * 4       # bf16 W + f32 b
        return pl.CostEstimate(flops=flops, transcendentals=trans,
                               bytes_accessed=nbytes)

    # -- forward ------------------------------------------------------------
    def forward(self, x):
        B, din = x.shape
        assert din == self.layer_sizes[0]
        d0p = self.padded_sizes[0]
        dlp = self.padded_sizes[-1]
        dout_real = self.layer_sizes[-1]

        kernel = functools.partial(_fused_mlp_kernel, activations=self.activations)
        flat = self._flat_params()
        n_in = 1 + len(flat)

        b_pad = _round_up(B, _SUBLANE)
        if b_pad <= self._MAX_SINGLE_BLOCK_BATCH:
            # Tiny case: single block resident in VMEM, no grid machinery.
            x_pad = jnp.zeros((b_pad, d0p), jnp.float32).at[:B, :din].set(x)
            vmem = pl.BlockSpec(memory_space=pltpu.MemorySpace.VMEM)
            out = pl.pallas_call(
                kernel,
                out_shape=jax.ShapeDtypeStruct((b_pad, dlp), jnp.float32),
                in_specs=[vmem] * n_in,
                out_specs=vmem,
                cost_estimate=self._cost_estimate(b_pad),
            )(x_pad, *flat)
        else:
            # Large batch: tile over batch, pipeline DMA, shard across TCs.
            bm = self._BATCH_TILE
            b_pad = _round_up(B, bm)
            x_pad = jnp.zeros((b_pad, d0p), jnp.float32).at[:B, :din].set(x)
            in_specs = [pl.BlockSpec((bm, d0p), lambda i: (i, 0))]
            for li in range(len(self.activations)):
                dinp, doutp = self.padded_sizes[li], self.padded_sizes[li + 1]
                in_specs.append(pl.BlockSpec((dinp, doutp), lambda i: (0, 0)))
                in_specs.append(pl.BlockSpec((1, doutp), lambda i: (0, 0)))
            out = pl.pallas_call(
                kernel,
                out_shape=jax.ShapeDtypeStruct((b_pad, dlp), jnp.float32),
                grid=(b_pad // bm,),
                in_specs=in_specs,
                out_specs=pl.BlockSpec((bm, dlp), lambda i: (i, 0)),
                compiler_params=pltpu.CompilerParams(
                    dimension_semantics=("parallel",)),
                cost_estimate=self._cost_estimate(b_pad),
            )(x_pad, *flat)

        return out[:B, :dout_real]

    # -- plain-JAX reference (same bf16-matmul path, exact activations) ------
    def forward_reference(self, x):
        B, din = x.shape
        h = jnp.zeros((B, self.padded_sizes[0]), jnp.float32).at[:, :din].set(x)
        for (w, b), act in zip(self.params, self.activations):
            y = jnp.dot(h.astype(jnp.bfloat16), w,
                        preferred_element_type=jnp.float32) + b
            h = _act_ref(act, y)
        return h[:, :self.layer_sizes[-1]]


# TODO(synk): genome plumbing (create_network / apply_weights / act epsilon-greedy)
# is host-side construction logic, not a device op; only the forward pass is a kernel.

if __name__ == "__main__":
    key = jax.random.PRNGKey(0)
    key, mk, xk1, xk2 = jax.random.split(key, 4)

    # Genome-implied network: 32 -> 64(relu) -> 96(tanh) -> 48(sigmoid) -> 8(identity)
    layer_sizes = [32, 64, 96, 48, 8]
    activations = ["relu", "tanh", "sigmoid", "identity"]
    net = NeuralNetworkDeepPallas(layer_sizes, activations, mk)

    # Tolerance covers bf16 MXU operands + approx EUP reciprocal in sigmoid.
    TOL = 2e-2

    # 1) small batch -> single fused block (no grid)
    x_small = jax.random.normal(xk1, (8, layer_sizes[0]), jnp.float32)
    out_small = jax.block_until_ready(net.forward(x_small))
    ref_small = net.forward_reference(x_small)
    assert out_small.shape == (8, layer_sizes[-1])
    assert jnp.allclose(out_small, ref_small, atol=TOL, rtol=TOL), "small-batch mismatch"

    # 2) larger batch -> batch-tiled grid path (parallel axis for megacore)
    x_big = jax.random.normal(xk2, (250, layer_sizes[0]), jnp.float32)
    out_big = jax.block_until_ready(net.forward(x_big))
    ref_big = net.forward_reference(x_big)
    assert out_big.shape == (250, layer_sizes[-1])
    assert jnp.allclose(out_big, ref_big, atol=TOL, rtol=TOL), "large-batch mismatch"

    print("KERNEL_OK")
</pallas_src>

<mosaic_0001>
module attributes {stable_mosaic.version = 11 : i64} {
  func.func @_fused_mlp_kernel(%arg0: memref<8x128xf32, #tpu.memory_space<vmem>>, %arg1: memref<128x128xbf16, #tpu.memory_space<vmem>>, %arg2: memref<1x128xf32, #tpu.memory_space<vmem>>, %arg3: memref<128x128xbf16, #tpu.memory_space<vmem>>, %arg4: memref<1x128xf32, #tpu.memory_space<vmem>>, %arg5: memref<128x128xbf16, #tpu.memory_space<vmem>>, %arg6: memref<1x128xf32, #tpu.memory_space<vmem>>, %arg7: memref<128x128xbf16, #tpu.memory_space<vmem>>, %arg8: memref<1x128xf32, #tpu.memory_space<vmem>>, %arg9: memref<8x128xf32, #tpu.memory_space<vmem>>) attributes {dimension_semantics = [], scalar_prefetch = 0 : i64, scratch_operands = 0 : i64, tpu.core_type = #tpu.core_type<tc>} {
    %c0 = arith.constant 0 : index
    %c0_0 = arith.constant 0 : index
    %0 = vector.load %arg0[%c0, %c0_0] : memref<8x128xf32, #tpu.memory_space<vmem>>, vector<8x128xf32>
    %c0_1 = arith.constant 0 : index
    %c0_2 = arith.constant 0 : index
    %1 = vector.load %arg1[%c0_1, %c0_2] : memref<128x128xbf16, #tpu.memory_space<vmem>>, vector<128x128xbf16>
    %c0_3 = arith.constant 0 : index
    %c0_4 = arith.constant 0 : index
    %2 = vector.load %arg2[%c0_3, %c0_4] : memref<1x128xf32, #tpu.memory_space<vmem>>, vector<1x128xf32>
    %3 = arith.truncf %0 : vector<8x128xf32> to vector<8x128xbf16>
    %cst = arith.constant dense<0.000000e+00> : vector<8x128xf32>
    %4 = tpu.matmul %3, %1, %cst {dimension_numbers = #tpu.dot_dimension_numbers<[1], [0], [0], [1], [0, 0, 1, 1], [], []>} : vector<8x128xbf16>, vector<128x128xbf16>, vector<8x128xf32> -> vector<8x128xf32>
    %5 = vector.broadcast %2 : vector<1x128xf32> to vector<8x128xf32>
    %6 = arith.addf %4, %5 : vector<8x128xf32>
    %cst_5 = arith.constant 0.000000e+00 : f32
    %7 = vector.broadcast %cst_5 : f32 to vector<8x128xf32>
    %8 = arith.maximumf %6, %7 : vector<8x128xf32>
    %c0_6 = arith.constant 0 : index
    %c0_7 = arith.constant 0 : index
    %9 = vector.load %arg3[%c0_6, %c0_7] : memref<128x128xbf16, #tpu.memory_space<vmem>>, vector<128x128xbf16>
    %c0_8 = arith.constant 0 : index
    %c0_9 = arith.constant 0 : index
    %10 = vector.load %arg4[%c0_8, %c0_9] : memref<1x128xf32, #tpu.memory_space<vmem>>, vector<1x128xf32>
    %11 = arith.truncf %8 : vector<8x128xf32> to vector<8x128xbf16>
    %cst_10 = arith.constant dense<0.000000e+00> : vector<8x128xf32>
    %12 = tpu.matmul %11, %9, %cst_10 {dimension_numbers = #tpu.dot_dimension_numbers<[1], [0], [0], [1], [0, 0, 1, 1], [], []>} : vector<8x128xbf16>, vector<128x128xbf16>, vector<8x128xf32> -> vector<8x128xf32>
    %13 = vector.broadcast %10 : vector<1x128xf32> to vector<8x128xf32>
    %14 = arith.addf %12, %13 : vector<8x128xf32>
    %15 = math.tanh %14 : vector<8x128xf32>
    %c0_11 = arith.constant 0 : index
    %c0_12 = arith.constant 0 : index
    %16 = vector.load %arg5[%c0_11, %c0_12] : memref<128x128xbf16, #tpu.memory_space<vmem>>, vector<128x128xbf16>
    %c0_13 = arith.constant 0 : index
    %c0_14 = arith.constant 0 : index
    %17 = vector.load %arg6[%c0_13, %c0_14] : memref<1x128xf32, #tpu.memory_space<vmem>>, vector<1x128xf32>
    %18 = arith.truncf %15 : vector<8x128xf32> to vector<8x128xbf16>
    %cst_15 = arith.constant dense<0.000000e+00> : vector<8x128xf32>
    %19 = tpu.matmul %18, %16, %cst_15 {dimension_numbers = #tpu.dot_dimension_numbers<[1], [0], [0], [1], [0, 0, 1, 1], [], []>} : vector<8x128xbf16>, vector<128x128xbf16>, vector<8x128xf32> -> vector<8x128xf32>
    %20 = vector.broadcast %17 : vector<1x128xf32> to vector<8x128xf32>
    %21 = arith.addf %19, %20 : vector<8x128xf32>
    %cst_16 = arith.constant 0.000000e+00 : f32
    %22 = vector.broadcast %cst_16 : f32 to vector<8x128xf32>
    %23 = arith.subf %22, %21 : vector<8x128xf32>
    %24 = math.exp %23 : vector<8x128xf32>
    %cst_17 = arith.constant 1.000000e+00 : f32
    %25 = vector.broadcast %cst_17 : f32 to vector<8x128xf32>
    %26 = arith.addf %25, %24 : vector<8x128xf32>
    %27 = tpu.reciprocal %26 {approx = true} : vector<8x128xf32> -> vector<8x128xf32>
    %c0_18 = arith.constant 0 : index
    %c0_19 = arith.constant 0 : index
    %28 = vector.load %arg7[%c0_18, %c0_19] : memref<128x128xbf16, #tpu.memory_space<vmem>>, vector<128x128xbf16>
    %c0_20 = arith.constant 0 : index
    %c0_21 = arith.constant 0 : index
    %29 = vector.load %arg8[%c0_20, %c0_21] : memref<1x128xf32, #tpu.memory_space<vmem>>, vector<1x128xf32>
    %30 = arith.truncf %27 : vector<8x128xf32> to vector<8x128xbf16>
    %cst_22 = arith.constant dense<0.000000e+00> : vector<8x128xf32>
    %31 = tpu.matmul %30, %28, %cst_22 {dimension_numbers = #tpu.dot_dimension_numbers<[1], [0], [0], [1], [0, 0, 1, 1], [], []>} : vector<8x128xbf16>, vector<128x128xbf16>, vector<8x128xf32> -> vector<8x128xf32>
    %32 = vector.broadcast %29 : vector<1x128xf32> to vector<8x128xf32>
    %33 = arith.addf %31, %32 : vector<8x128xf32>
    %c0_23 = arith.constant 0 : index
    %c0_24 = arith.constant 0 : index
    %34 = vector.load %arg9[%c0_23, %c0_24] : memref<8x128xf32, #tpu.memory_space<vmem>>, vector<8x128xf32>
    tpu.vector_store %arg9[%c0_23, %c0_24], %33 {strides = array<i32>} : memref<8x128xf32, #tpu.memory_space<vmem>>, vector<8x128xf32>,
    return
  }
}

</mosaic_0001>

<bundles_post_ra>
// kernel: tpu_custom_call.1
= control target key start
LH: loop header
LB: loop body
LE: loop exit
PB: predicated region body
PF: predicated region fallthrough
CT: control target
= control target key end

     0   :  { %14 = vsyncpa [#allocation3], 0  ;;  %s883_s0 = inlined_call_operand.hbm [shape: f32[8,128], index: 0, kind: input, shape index: {}]   ;;  %s884_s1 = inlined_call_operand.hbm [shape: bf16[128,128], index: 1, kind: input, shape index: {}]   ;;  %s885_s2 = inlined_call_operand.vmem [shape: f32[1,128], index: 2, kind: input, shape index: {}]   ;;  %s886_s3 = inlined_call_operand.hbm [shape: bf16[128,128], index: 3, kind: input, shape index: {}]   ;;  %s887_s4 = inlined_call_operand.vmem [shape: f32[1,128], index: 4, kind: input, shape index: {}]   ;;  %s888_s5 = inlined_call_operand.hbm [shape: bf16[128,128], index: 5, kind: input, shape index: {}]   ;;  %s889_s6 = inlined_call_operand.vmem [shape: f32[1,128], index: 6, kind: input, shape index: {}]   ;;  %s890_s7 = inlined_call_operand.hbm [shape: bf16[128,128], index: 7, kind: input, shape index: {}]   ;;  %s891_s8 = inlined_call_operand.vmem [shape: f32[1,128], index: 8, kind: input, shape index: {}]   ;;  %s892_s9 = inlined_call_operand.hbm [shape: f32[8,128], index: 9, kind: output, shape index: {}]  }
   0x1   :  { %15 = vsyncpa [#allocation6], 0 }
   0x2   :  { %16 = vsyncpa [#allocation9], 0  ;;  %s33_s11 = sshll.u32 %s884_s1, 4  ;;  %s34_s11 = int_to_ptr.hbm [resolvable:$true] %s33_s11 }
   0x3   :  { %17 = vsyncpa [#allocation4], 0  ;;  %s795_s12 = smov [#allocation5]   ;;  %s63_s16 = sshll.u32 %s888_s5, 4  ;;  %s64_s16 = int_to_ptr.hbm [resolvable:$true] %s63_s16 }
   0x4   :  { %s35_s13 = sshll.u32 %s795_s12, 4  ;;  %s796_s17 = smov 64   ;;  %s36_s13 = int_to_ptr.vmem [resolvable:$true] %s35_s13 }
   0x5   :  { %s797_s18 = smov 4   ;;  %s798_s19 = smov [#allocation8]  }
   0x6   :  { %41 = dma.hbm_to_vmem [thread:$0]  %s34_s11, 1024, %s36_s13, [#allocation6], %s796_s17, %s796_s17, %s797_s18  }
   0x7   :  { %s65_s20 = sshll.u32 %s798_s19, 4  ;;  %s23_s23 = sshll.u32 %s883_s0, 4  ;;  %s66_s20 = int_to_ptr.vmem [resolvable:$true] %s65_s20  ;;  %s24_s23 = int_to_ptr.hbm [resolvable:$true] %s23_s23 }
   0x8   :  { %71 = dma.hbm_to_vmem [thread:$0]  %s64_s16, 1024, %s66_s20, [#allocation9], %s796_s17, %s796_s17, %s797_s18  }
   0x9   :  { %s48_s25 = sshll.u32 %s886_s3, 4  ;;  %s799_s26 = smov [#allocation2]   ;;  %s49_s25 = int_to_ptr.hbm [resolvable:$true] %s48_s25 }
   0xa   :  { %s25_s27 = sshll.u32 %s799_s26, 4  ;;  %s800_s5 = smov [#allocation7]   ;;  %s26_s27 = int_to_ptr.vmem [resolvable:$true] %s25_s27 }
   0xb   :  { %28 = dma.hbm_to_vmem [thread:$0]  %s24_s23, 128, %s26_s27, [#allocation3]  }
   0xc   :  { %s50_s28 = sshll.u32 %s800_s5, 4  ;;  %s78_s10 = sshll.u32 %s890_s7, 4  ;;  %s51_s28 = int_to_ptr.vmem [resolvable:$true] %s50_s28  ;;  %s79_s10 = int_to_ptr.hbm [resolvable:$true] %s78_s10 }
   0xd   :  { %56 = dma.hbm_to_vmem [thread:$0]  %s49_s25, 1024, %s51_s28, [#allocation6], %s796_s17, %s796_s17, %s797_s18  }
   0xe   :  { %s801_s0 = smov [#allocation10]  }
   0xf   :  { %s80_s11 = sshll.u32 %s801_s0, 4  ;;  %s81_s11 = int_to_ptr.vmem [resolvable:$true] %s80_s11 }
  0x10   :  { %86 = dma.hbm_to_vmem [thread:$0]  %s79_s10, 1024, %s81_s11, [#allocation9], %s796_s17, %s796_s17, %s797_s18  }
  0x11   :  { %787 = dma.done.wait [#allocation3], 128  }
  0x12   :  { %788 = vsyncadd [#allocation3], 4294967168 }
  0x13   :  { %789 = dma.done.wait [#allocation6], 2048  }
  0x14   :  { %790 = vsyncadd [#allocation6], 4294965248 }
  0x15   :  { %791 = dma.done.wait [#allocation9], 2048  }
  0x16   :  { %792 = vsyncadd [#allocation9], 4294965248  ;;  %v600_v0 = vld [vmem:[#allocation5 + $0x38] sm:$0xff]  ;;  %v599_v1 = vld [vmem:[#allocation5 + $0x30] sm:$0xff]  ;;  %s802_s16 = smov [#allocation11]   ;;  %s453_s19 = sshll.u32 %s892_s9, 4  ;;  %s454_s19 = int_to_ptr.hbm [resolvable:$true] %s453_s19 }
  0x17   :  { %179 = vmatpush.bf16.msra.mxu0 %v600_v0  ;;  %v608_v2 = vld [vmem:[#allocation7 + $0x38] sm:$0xff]  ;;  %v607_v3 = vld [vmem:[#allocation7 + $0x30] sm:$0xff]  ;;  %v598_v4 = vld [vmem:[#allocation5 + $0x28] sm:$0xff]  ;;  %s451_s17 = sshll.u32 %s802_s16, 4  ;;  %s452_s17 = int_to_ptr.vmem [resolvable:$true] %s451_s17 }
  0x18   :  { %262 = vmatpush.bf16.msra.mxu1 %v608_v2  ;;  %v606_v5 = vld [vmem:[#allocation7 + $0x28] sm:$0xff]  ;;  %v597_v6 = vld [vmem:[#allocation5 + $0x20] sm:$0xff]  ;;  %v596_v8 = vld [vmem:[#allocation5 + $0x18] sm:$0xff] }
  0x19   :  { %v605_v7 = vld [vmem:[#allocation7 + $0x20] sm:$0xff]  ;;  %v604_v9 = vld [vmem:[#allocation7 + $0x18] sm:$0xff]  ;;  %v595_v10 = vld [vmem:[#allocation5 + $0x10] sm:$0xff] }
  0x1a   :  { %v603_v11 = vld [vmem:[#allocation7 + $0x10] sm:$0xff]  ;;  %v594_v12 = vld [vmem:[#allocation5 + $0x8] sm:$0xff]  ;;  %v593_v13 = vld [vmem:[#allocation5] sm:$0xff] }
  0x1b   :  { %180 = vmatpush.bf16.msra.mxu0 %v599_v1  ;;  %v109_v14 = vld [vmem:[#allocation2] sm:$0xff]  ;;  %v602_v16 = vld [vmem:[#allocation7 + $0x8] sm:$0xff]  ;;  %v601_v17 = vld [vmem:[#allocation7] sm:$0xff] }
  0x1c   :  { %263 = vmatpush.bf16.msra.mxu1 %v607_v3  ;;  %v127_v15 = vpack.c.bf16 %v109_v14, %v109_v14  ;;  %v616_v18 = vld [vmem:[#allocation8 + $0x38] sm:$0xff]  ;;  %v615_v19 = vld [vmem:[#allocation8 + $0x30] sm:$0xff]  ;;  %v614_v20 = vld [vmem:[#allocation8 + $0x28] sm:$0xff] }
  0x1d   :  { %345 = vmatpush.bf16.msra.mxu2 %v616_v18  ;;  %v613_v21 = vld [vmem:[#allocation8 + $0x20] sm:$0xff]  ;;  %v612_v22 = vld [vmem:[#allocation8 + $0x18] sm:$0xff]  ;;  %v611_v29 = vld [vmem:[#allocation8 + $0x10] sm:$0xff] }
  0x1e   :  { %v633_v23 = vld [vmem:[%s885_s2] ss:$0 sm:$0xff]  ;;  %v610_v30 = vld [vmem:[#allocation8 + $0x8] sm:$0xff]  ;;  %v609_v31 = vld [vmem:[#allocation8] sm:$0xff] }
  0x1f   :  { %181 = vmatpush.bf16.msra.mxu0 %v598_v4  ;;  %v624_v32 = vld [vmem:[#allocation10 + $0x38] sm:$0xff]  ;;  %v623_v33 = vld [vmem:[#allocation10 + $0x30] sm:$0xff]  ;;  %v622_v40 = vld [vmem:[#allocation10 + $0x28] sm:$0xff] }
  0x20   :  { %264 = vmatpush.bf16.msra.mxu1 %v606_v5  ;;  %432 = vmatpush.bf16.msra.mxu3 %v624_v32  ;;  %v634_v34 = vld [vmem:[%s887_s4] ss:$0 sm:$0xff]  ;;  %v621_v41 = vld [vmem:[#allocation10 + $0x20] sm:$0xff]  ;;  %v619_v43 = vld [vmem:[#allocation10 + $0x10] sm:$0xff] }
  0x21   :  { %346 = vmatpush.bf16.msra.mxu2 %v615_v19  ;;  %v620_v42 = vld [vmem:[#allocation10 + $0x18] sm:$0xff]  ;;  %v618_v44 = vld [vmem:[#allocation10 + $0x8] sm:$0xff]  ;;  %v617_v45 = vld [vmem:[#allocation10] sm:$0xff] }
  0x22   :  { %v635_v46 = vld [vmem:[%s889_s6] ss:$0 sm:$0xff] }
  0x23   :  { %182 = vmatpush.bf16.msra.mxu0 %v597_v6  ;;  %v636_v56 = vld [vmem:[%s891_s8] ss:$0 sm:$0xff] }
  0x24   :  { %265 = vmatpush.bf16.msra.mxu1 %v605_v7  ;;  %433 = vmatpush.bf16.msra.mxu3 %v623_v33 }
  0x25   :  { %347 = vmatpush.bf16.msra.mxu2 %v614_v20 }
  0x27   :  { %183 = vmatpush.bf16.msra.mxu0 %v596_v8 }
  0x28   :  { %266 = vmatpush.bf16.msra.mxu1 %v604_v9  ;;  %434 = vmatpush.bf16.msra.mxu3 %v622_v40 }
  0x29   :  { %348 = vmatpush.bf16.msra.mxu2 %v613_v21 }
  0x2b   :  { %184 = vmatpush.bf16.msra.mxu0 %v595_v10 }
  0x2c   :  { %267 = vmatpush.bf16.msra.mxu1 %v603_v11  ;;  %435 = vmatpush.bf16.msra.mxu3 %v621_v41 }
  0x2d   :  { %349 = vmatpush.bf16.msra.mxu2 %v612_v22 }
  0x2f   :  { %185 = vmatpush.bf16.msra.mxu0 %v594_v12 }
  0x30   :  { %268 = vmatpush.bf16.msra.mxu1 %v602_v16  ;;  %436 = vmatpush.bf16.msra.mxu3 %v620_v42 }
  0x31   :  { %350 = vmatpush.bf16.msra.mxu2 %v611_v29 }
  0x33   :  { %186 = vmatpush.bf16.msra.mxu0 %v593_v13 }
  0x34   :  { %269 = vmatpush.bf16.msra.mxu1 %v601_v17  ;;  %437 = vmatpush.bf16.msra.mxu3 %v619_v43 }
  0x35   :  { %351 = vmatpush.bf16.msra.mxu2 %v610_v30 }
  0x36   :  { %187 = vmatmul.bf16.vlgmr.msra.gmra.mxu0 %v127_v15 }
  0x38   :  { %438 = vmatpush.bf16.msra.mxu3 %v618_v44 }
  0x39   :  { %352 = vmatpush.bf16.msra.mxu2 %v609_v31 }
  0x3c   :  { %439 = vmatpush.bf16.msra.mxu3 %v617_v45 }
  0xb3   :  { %v188_v24 = vpop.f32.mrf.mxu0 }
  0xb4   :  { %v189_v25 = vadd.f32 %v633_v23, %v188_v24 }
  0xb6   :  { %v192_v26 = vmax.f32 %v189_v25, 0.0 }
  0xb8   :  { %v210_v27 = vpack.c.bf16 %v192_v26, %v192_v26 }
  0xba   :  { %270 = vmatmul.bf16.vlgmr.msra.gmra.mxu1 %v210_v27 }
  0xbb   :  { %v190_v28 = vpop.f32.mrf.mxu0 }
 0x137   :  { %v271_v35 = vpop.f32.mrf.mxu1 }
 0x138   :  { %v272_v36 = vadd.f32 %v634_v34, %v271_v35 }
 0x13a   :  { %637 = vtanh.f32 %v272_v36 }
 0x13f   :  { %v273_v37 = vpop.f32.mrf.mxu1 }
 0x140   :  { %v638_v38 = vpop.eup %637 }
 0x141   :  { %v293_v39 = vpack.c.bf16 %v638_v38, %v638_v38 }
 0x143   :  { %353 = vmatmul.bf16.vlgmr.msra.gmra.mxu2 %v293_v39 }
 0x1c6   :  { %v354_v47 = vpop.f32.mrf.mxu2 }
 0x1c7   :  { %v355_v48 = vadd.f32 %v635_v46, %v354_v47 }
 0x1c9   :  { %v358_v49 = vsub.f32 0.0, %v355_v48 }
 0x1cb   :  { %v359_v50 = vmul.f32 1.442695, %v358_v49 }
 0x1cd   :  { %639 = vpow2.f32 %v359_v50 }
 0x1ce   :  { %v356_v51 = vpop.f32.mrf.mxu2 }
 0x1d3   :  { %v640_v52 = vpop.eup %639 }
 0x1d4   :  { %v361_v53 = vadd.f32 1.0, %v640_v52 }
 0x1d6   :  { %641 = vrcp.f32 %v361_v53 }
 0x1dc   :  { %v642_v54 = vpop.eup %641 }
 0x1dd   :  { %v380_v55 = vpack.c.bf16 %v642_v54, %v642_v54 }
 0x1df   :  { %440 = vmatmul.bf16.vlgmr.msra.gmra.mxu3 %v380_v55 }
 0x262   :  { %v441_v57 = vpop.f32.mrf.mxu3 }
 0x263   :  { %v442_v58 = vadd.f32 %v636_v56, %v441_v57 }
 0x265   :  { %445 = vst [vmem:[#allocation11] sm:$0xff] %v442_v58 }
 0x266   :  { %456 = dma.vmem_to_hbm [thread:$0]  %s452_s17, 128, %s454_s19, [#allocation4]  }
 0x26a   :  { %v443_v59 = vpop.f32.mrf.mxu3 }
 0x26b   :  { %793 = dma.done.wait [#allocation4], 128  }
 0x26c   :  { %794 = vsyncadd [#allocation4], 4294967168 }
 0x26d   :  { %461 = vsyncpa [#allocation3], 1 }
 0x26e   :  { %462 = vsyncpa [#allocation6], 1 }
 0x26f   :  { %463 = vsyncpa [#allocation9], 1 }
 0x270   :  { %464 = vsyncpa [#allocation4], 1 }

</bundles_post_ra>
